<compile_context>
chip_gen: v7x
topology: tpu7x:2x2x1
jax: 0.10.0
libtpu: 0.0.40
codegen_flags: <defaults>
</compile_context>

<pallas_src>
import functools

import jax
import jax.numpy as jnp
from jax.experimental import pallas as pl
from jax.experimental.pallas import tpu as pltpu

_LANES = 128        # vreg lane width; everything is lane-dense
_VEC_ROWS = 8       # one sublane tile: x(+bias lane), b2, b3, 5x zero


def _round_up(n, m):
    return (n + m - 1) // m * m


def _make_kernel(K1, K2, K3):
    """Build the MLP kernel for a slab with weight blocks of K1/K2/K3 rows."""
    r1 = _VEC_ROWS
    r2 = r1 + K1
    r3 = r2 + K2
    r4 = r3 + K3

    def kernel(slab_ref, out_ref):
        # Static slices of the VMEM-resident slab (free ref views).
        x = slab_ref[0:1, :]                 # (1,128): emb | 1.0 @ lane H1 | zeros
        b2 = slab_ref[1:2, :]                # (1,128)
        b3 = slab_ref[2:3, :]                # (1,128)
        w1 = slab_ref[r1:r2, :]              # (K1,128), b1 folded into row H1
        w2 = slab_ref[r2:r3, :]              # (K2,128)
        w3 = slab_ref[r3:r4, :]              # (K3,128)

        # Padded rows/lanes are zero, so the padded matmuls are exact.
        h = jnp.dot(x[:, :K1], w1, preferred_element_type=jnp.float32)   # L1 + b1
        h = jnp.where(h > 0, h, 0.1 * h)                                 # LeakyReLU(0.1)
        h = jnp.dot(h[:, :K2], w2, preferred_element_type=jnp.float32) + b2
        h = jnp.where(h > 0, h, 0.1 * h)                                 # LeakyReLU(0.1)
        h = jnp.dot(h[:, :K3], w3, preferred_element_type=jnp.float32) + b3
        # Full 128-lane row; lanes >= out_dim hold sigmoid(0)=0.5 and are
        # sliced off in the wrapper.
        out_ref[...] = jax.nn.sigmoid(h)

    return kernel


def pack_params(params):
    """Pack all parameters ONCE into a single lane-padded f32 slab.

    Layout (rows x 128 lanes):
      row 0          : dummy_embedding (lanes 0..H1-1), 1.0 at lane H1 (bias fold)
      row 1 / 2      : b2 / b3 (zero padded)
      rows 3..7      : zero (pad the vector block to one (8,128) tile)
      rows 8..8+K1-1 : W1 (H1 x H2) with b1 in row H1, rest zero   K1 = ceil8(H1+1)
      next K2 rows   : W2 (H2 x H2), rest zero                     K2 = ceil8(H2)
      next K3 rows   : W3 (H2 x P*P), rest zero                    K3 = ceil8(H2)
    """
    f32 = jnp.float32
    emb = params["emb"].astype(f32)
    w1, b1 = params["w1"].astype(f32), params["b1"].astype(f32)
    w2, b2 = params["w2"].astype(f32), params["b2"].astype(f32)
    w3, b3 = params["w3"].astype(f32), params["b3"].astype(f32)

    H1, H2 = int(w1.shape[0]), int(w1.shape[1])
    out_dim = int(w3.shape[1])
    assert H1 + 1 <= _LANES and H2 <= _LANES and out_dim <= _LANES

    K1 = _round_up(H1 + 1, 8)
    K2 = _round_up(H2, 8)
    K3 = _round_up(H2, 8)

    def pad_vec(v):
        return jnp.zeros((_LANES,), f32).at[: v.shape[0]].set(v)

    # Row 0: embedding + homogeneous 1.0 lane for the folded b1.
    x_row = jnp.zeros((_LANES,), f32).at[:H1].set(emb).at[H1].set(1.0)
    zero_row = jnp.zeros((_LANES,), f32)
    vec_blk = jnp.stack(
        [x_row, pad_vec(b2), pad_vec(b3),
         zero_row, zero_row, zero_row, zero_row, zero_row], axis=0)       # (8,128)

    w1_blk = (jnp.zeros((K1, _LANES), f32)
              .at[:H1, :H2].set(w1)
              .at[H1, :H2].set(b1))                                       # b1 folded
    w2_blk = jnp.zeros((K2, _LANES), f32).at[:H2, :H2].set(w2)
    w3_blk = jnp.zeros((K3, _LANES), f32).at[:H2, :out_dim].set(w3)

    slab = jnp.concatenate([vec_blk, w1_blk, w2_blk, w3_blk], axis=0)
    assert slab.shape == (_VEC_ROWS + K1 + K2 + K3, _LANES)
    layout = dict(K1=K1, K2=K2, K3=K3, out_dim=out_dim)
    return slab, layout


@functools.partial(jax.jit, static_argnames=("K1", "K2", "K3", "out_dim"))
def global_policy_meta_nomag_forward(slab, dummy_input=None, *, K1, K2, K3, out_dim):
    """slab: packed (8+K1+K2+K3, 128) f32 params; dummy_input ignored (as in PyTorch)."""
    slab_bytes = slab.size * slab.dtype.itemsize
    out = pl.pallas_call(
        _make_kernel(K1, K2, K3),
        out_shape=jax.ShapeDtypeStruct((1, _LANES), jnp.float32),
        in_specs=[pl.BlockSpec(memory_space=pltpu.MemorySpace.VMEM)],
        out_specs=pl.BlockSpec(memory_space=pltpu.MemorySpace.VMEM),
        cost_estimate=pl.CostEstimate(
            flops=2 * _LANES * (K1 + K2 + K3),
            transcendentals=_LANES,
            bytes_accessed=slab_bytes + _LANES * 4,
        ),
    )(slab)
    return out[0, :out_dim]                                  # (P*P,) like PyTorch


def init_params(key, H1, H2, len_policies):
    """Deterministic synthetic init (shapes mirror the PyTorch __init__)."""
    ks = jax.random.split(key, 7)
    out_dim = len_policies * len_policies

    def lin(kw, kb, fan_in, fan_out):
        # PyTorch Linear default: U(-1/sqrt(fan_in), 1/sqrt(fan_in))
        lim = 1.0 / jnp.sqrt(fan_in)
        w = jax.random.uniform(kw, (fan_in, fan_out), jnp.float32, -lim, lim)
        b = jax.random.uniform(kb, (fan_out,), jnp.float32, -lim, lim)
        return w, b

    emb = jax.random.uniform(ks[0], (H1,), jnp.float32)      # torch.rand(H1)
    w1, b1 = lin(ks[1], ks[2], H1, H2)
    w2, b2 = lin(ks[3], ks[4], H2, H2)
    w3, b3 = lin(ks[5], ks[6], H2, out_dim)
    return dict(emb=emb, w1=w1, b1=b1, w2=w2, b2=b2, w3=w3, b3=b3)


def _reference(params):
    lrelu = lambda x: jnp.where(x > 0, x, 0.1 * x)
    h = lrelu(params["emb"] @ params["w1"] + params["b1"])
    h = lrelu(h @ params["w2"] + params["b2"])
    return jax.nn.sigmoid(h @ params["w3"] + params["b3"])


if __name__ == "__main__":
    H1, H2, len_policies = 32, 32, 4          # small shapes consistent with the module
    key = jax.random.PRNGKey(0)
    params = init_params(key, H1, H2, len_policies)

    # One-time packing (outside the hot path).
    slab, layout = pack_params(params)
    slab = jax.block_until_ready(slab)

    dummy_input = jnp.zeros((1,), jnp.float32)  # ignored by the forward, as in PyTorch
    out = global_policy_meta_nomag_forward(
        slab, dummy_input,
        K1=layout["K1"], K2=layout["K2"], K3=layout["K3"], out_dim=layout["out_dim"])
    out = jax.block_until_ready(out)

    ref = _reference(params)
    assert out.shape == (len_policies * len_policies,)
    assert jnp.allclose(out, ref, atol=1e-5, rtol=1e-5)
    print("KERNEL_OK")
</pallas_src>

<mosaic_0001>
module attributes {stable_mosaic.version = 11 : i64} {
  func.func @kernel(%arg0: memref<112x128xf32, #tpu.memory_space<vmem>>, %arg1: memref<1x128xf32, #tpu.memory_space<vmem>>) attributes {dimension_semantics = [], scalar_prefetch = 0 : i64, scratch_operands = 0 : i64, tpu.core_type = #tpu.core_type<tc>} {
    %c0 = arith.constant 0 : index
    %c0_0 = arith.constant 0 : index
    %0 = vector.load %arg0[%c0, %c0_0] : memref<112x128xf32, #tpu.memory_space<vmem>>, vector<1x128xf32>
    %c1 = arith.constant 1 : index
    %c0_1 = arith.constant 0 : index
    %1 = vector.load %arg0[%c1, %c0_1] : memref<112x128xf32, #tpu.memory_space<vmem>>, vector<1x128xf32>
    %c2 = arith.constant 2 : index
    %c0_2 = arith.constant 0 : index
    %2 = vector.load %arg0[%c2, %c0_2] : memref<112x128xf32, #tpu.memory_space<vmem>>, vector<1x128xf32>
    %c8 = arith.constant 8 : index
    %c0_3 = arith.constant 0 : index
    %3 = vector.load %arg0[%c8, %c0_3] : memref<112x128xf32, #tpu.memory_space<vmem>>, vector<40x128xf32>
    %c48 = arith.constant 48 : index
    %c0_4 = arith.constant 0 : index
    %4 = vector.load %arg0[%c48, %c0_4] : memref<112x128xf32, #tpu.memory_space<vmem>>, vector<32x128xf32>
    %c80 = arith.constant 80 : index
    %c0_5 = arith.constant 0 : index
    %5 = vector.load %arg0[%c80, %c0_5] : memref<112x128xf32, #tpu.memory_space<vmem>>, vector<32x128xf32>
    %6 = vector.extract_strided_slice %0 {offsets = [0, 0], sizes = [1, 40], strides = [1, 1]} : vector<1x128xf32> to vector<1x40xf32>
    %cst = arith.constant dense<0.000000e+00> : vector<1x128xf32>
    %7 = tpu.matmul %6, %3, %cst {dimension_numbers = #tpu.dot_dimension_numbers<[1], [0], [0], [1], [0, 0, 1, 1], [], []>} : vector<1x40xf32>, vector<40x128xf32>, vector<1x128xf32> -> vector<1x128xf32>
    %cst_6 = arith.constant 0.000000e+00 : f32
    %8 = vector.broadcast %cst_6 : f32 to vector<1x128xf32>
    %9 = arith.cmpf ogt, %7, %8 : vector<1x128xf32>
    %cst_7 = arith.constant 1.000000e-01 : f32
    %10 = vector.broadcast %cst_7 : f32 to vector<1x128xf32>
    %11 = arith.mulf %10, %7 : vector<1x128xf32>
    %12 = arith.select %9, %7, %11 : vector<1x128xi1>, vector<1x128xf32>
    %13 = vector.extract_strided_slice %12 {offsets = [0, 0], sizes = [1, 32], strides = [1, 1]} : vector<1x128xf32> to vector<1x32xf32>
    %cst_8 = arith.constant dense<0.000000e+00> : vector<1x128xf32>
    %14 = tpu.matmul %13, %4, %cst_8 {dimension_numbers = #tpu.dot_dimension_numbers<[1], [0], [0], [1], [0, 0, 1, 1], [], []>} : vector<1x32xf32>, vector<32x128xf32>, vector<1x128xf32> -> vector<1x128xf32>
    %15 = arith.addf %14, %1 : vector<1x128xf32>
    %cst_9 = arith.constant 0.000000e+00 : f32
    %16 = vector.broadcast %cst_9 : f32 to vector<1x128xf32>
    %17 = arith.cmpf ogt, %15, %16 : vector<1x128xf32>
    %cst_10 = arith.constant 1.000000e-01 : f32
    %18 = vector.broadcast %cst_10 : f32 to vector<1x128xf32>
    %19 = arith.mulf %18, %15 : vector<1x128xf32>
    %20 = arith.select %17, %15, %19 : vector<1x128xi1>, vector<1x128xf32>
    %21 = vector.extract_strided_slice %20 {offsets = [0, 0], sizes = [1, 32], strides = [1, 1]} : vector<1x128xf32> to vector<1x32xf32>
    %cst_11 = arith.constant dense<0.000000e+00> : vector<1x128xf32>
    %22 = tpu.matmul %21, %5, %cst_11 {dimension_numbers = #tpu.dot_dimension_numbers<[1], [0], [0], [1], [0, 0, 1, 1], [], []>} : vector<1x32xf32>, vector<32x128xf32>, vector<1x128xf32> -> vector<1x128xf32>
    %23 = arith.addf %22, %2 : vector<1x128xf32>
    %24 = arith.negf %23 : vector<1x128xf32>
    %25 = math.exp %24 : vector<1x128xf32>
    %cst_12 = arith.constant 1.000000e+00 : f32
    %26 = vector.broadcast %cst_12 : f32 to vector<1x128xf32>
    %27 = arith.addf %26, %25 : vector<1x128xf32>
    %28 = arith.divf %26, %27 : vector<1x128xf32>
    %c0_13 = arith.constant 0 : index
    %c0_14 = arith.constant 0 : index
    %29 = vector.load %arg1[%c0_13, %c0_14] : memref<1x128xf32, #tpu.memory_space<vmem>>, vector<1x128xf32>
    tpu.vector_store %arg1[%c0_13, %c0_14], %28 {strides = array<i32>} : memref<1x128xf32, #tpu.memory_space<vmem>>, vector<1x128xf32>,
    return
  }
}

</mosaic_0001>

<bundles_post_ra>
// kernel: global_policy_meta_nomag_forward.1
= control target key start
LH: loop header
LB: loop body
LE: loop exit
PB: predicated region body
PF: predicated region fallthrough
CT: control target
= control target key end

     0   :  { %6 = vsyncpa [#allocation3], 0  ;;  %s384_s6 = smov [#allocation2]   ;;  %s420_s0 = inlined_call_operand.hbm [shape: f32[112,128], index: 0, kind: input, shape index: {}]   ;;  %s421_s1 = inlined_call_operand.vmem [shape: f32[1,128], index: 1, kind: output, shape index: {}]  }
   0x1   :  { %s12_s7 = sshll.u32 %s384_s6, 4  ;;  %s360_s10 = scalar_lea.hbm %s420_s0, 1792  ;;  %s13_s7 = int_to_ptr.vmem [resolvable:$true] %s12_s7 }
   0x2   :  { %p361_p0 = scmp.ne.s32.totalorder %s420_s0, %s360_s10  ;;  %p364_p1 = scmp.lt.u32.totalorder %s360_s10, %s420_s0 }
   0x4   :  { %p366_p2 = pnand %p364_p1, %p361_p0 }
   0x6   :  { %369 = shalt.err (!%p366_p2)
}
   0x7   :  { %s370_s15 = scalar_lea.vmem %s13_s7, 1792  ;;  %p375_p4 = scmp.lt.s32.totalorder %s13_s7, %s13_s7 }
   0x8   :  { %p371_p3 = scmp.ne.s32.totalorder %s13_s7, %s370_s15  ;;  %p376_p5 = scmp.lt.s32.totalorder %s370_s15, %s370_s15 }
   0xa   :  { %p377_p6 = por %p376_p5, %p375_p4 }
   0xc   :  { %p378_p7 = pnand %p377_p6, %p371_p3 }
   0xe   :  { %381 = shalt.err (!%p378_p7)
}
   0xf   :  { %s385_s16 = smov 128   ;;  %s386_s17 = smov 8  }
  0x10   :  { %18 = dma.hbm_to_vmem [thread:$0]  %s420_s0, 1792, %s13_s7, [#allocation3], %s385_s16, %s385_s16, %s386_s17  }
  0x11   :  { %382 = dma.done.wait [#allocation3], 1792  }
  0x12   :  { %383 = vsyncadd [#allocation3], 4294965504  ;;  %v387_v0 = vmov 0.0|0.0   ;;  %vm388_vm0 = vmmov 0   ;;  %v389_v1 = vmov 0.0   ;;  %v25_v2 = vld [vmem:[#allocation2 + $0x8] sm:$0xff] }
  0x13   :  { %332 = vmatprep.subr.bf16.mxu0 %v387_v0  ;;  %307 = vmatprep.mubr.msk.f32.mxu0 %vm388_vm0, %v389_v1  ;;  %v26_v3 = vld [vmem:[#allocation2 + $0x10] sm:$0xff]  ;;  %v27_v4 = vld [vmem:[#allocation2 + $0x18] sm:$0xff]  ;;  %v28_v6 = vld [vmem:[#allocation2 + $0x20] sm:$0xff]  ;;  %vm38_vm1 = vcmask 326656   ;;  %vm115_vm3 = vcmask 261120  }
  0x14   :  { %338 = vmatprep.subr.bf16.mxu1 %v387_v0  ;;  %318 = vmatprep.mubr.msk.f32.mxu1 %vm388_vm0, %v389_v1  ;;  %v333_v5 = vpack.c.bf16 %v26_v3, %v25_v2  ;;  %v30_v7 = vld [vmem:[#allocation2 + $0x30] sm:$0xff]  ;;  %v31_v8 = vld [vmem:[#allocation2 + $0x38] sm:$0xff]  ;;  %v336_v9 = vpack.c.bf16 %v28_v6, %v27_v4  ;;  %v29_v11 = vld [vmem:[#allocation2 + $0x28] sm:$0xff] }
  0x15   :  { %v339_v10 = vpack.c.bf16 %v31_v8, %v30_v7  ;;  %v22_v12 = vld [vmem:[#allocation2] sm:$0x1]  ;;  %v33_v14 = vld [vmem:[#allocation2 + $0x48] sm:$0xff]  ;;  %v34_v16 = vld [vmem:[#allocation2 + $0x50] sm:$0xff] }
  0x16   :  { %334 = vmatpush3.bf16.msra.mxu0 %v333_v5  ;;  %v32_v13 = vld [vmem:[#allocation2 + $0x40] sm:$0xff]  ;;  %v35_v17 = vld [vmem:[#allocation2 + $0x58] sm:$0xff]  ;;  %v37_v24 = vld [vmem:[#allocation2 + $0x68] sm:$0xff] }
  0x17   :  { %335 = vmatprep.subr.bf16.mxu0 %v387_v0  ;;  %340 = vmatpush3.bf16.msra.mxu1 %v339_v10  ;;  %v342_v15 = vpack.c.bf16 %v33_v14, %v32_v13  ;;  %v345_v21 = vpack.c.bf16 %v35_v17, %v34_v16  ;;  %v36_v23 = vld [vmem:[#allocation2 + $0x60] sm:$0xff] }
  0x18   :  { %341 = vmatprep.subr.bf16.mxu1 %v387_v0  ;;  %v348_v25 = vpack.c.bf16 %v37_v24, %v36_v23  ;;  %v23_v26 = vld [vmem:[#allocation2 + $0x1] sm:$0x1]  ;;  %v24_v32 = vld [vmem:[#allocation2 + $0x2] sm:$0x1] }
  0x1a   :  { %337 = vmatpush3.bf16.msra.mxu0 %v336_v9 }
  0x1b   :  { %305 = vmatprep.subr.mxu0 %v389_v1  ;;  %343 = vmatpush3.bf16.msra.mxu1 %v342_v15 }
  0x1c   :  { %344 = vmatprep.subr.bf16.mxu1 %v387_v0 }
  0x1e   :  { %306 = vmatpush3.msra.mxu0 %v29_v11 }
  0x1f   :  { %308 = vmatmul.mubr.msk.f32.vlgmr.msra.gmra.mrb[0].mxu0 %vm38_vm1, %v22_v12 }
  0xf2   :  { %v108_v18 = vpop.f32.mrb[0].mxu0 }
  0xf3   :  { %vm112_vm2 = vcmp.gt.f32.partialorder %v108_v18, 0.0  ;;  %v113_v19 = vmul.f32 0.1, %v108_v18  ;;  %v309_v20 = vpop.f32.mrb[1].mxu0 }
  0xf5   :  { %v114_v22 = vsel %vm112_vm2, %v108_v18, %v113_v19 }
  0xf6   :  { %319 = vmatmul.mubr.msk.f32.vlgmr.msra.gmra.mrb[0].mxu1 %vm115_vm3, %v114_v22 }
  0xf7   :  { %346 = vmatpush3.bf16.msra.mxu1 %v345_v21  ;;  %329 = vmatprep.mubr.msk.f32.mxu1 %vm388_vm0, %v389_v1 }
  0xf8   :  { %347 = vmatprep.subr.bf16.mxu1 %v387_v0 }
  0xfb   :  { %349 = vmatpush3.bf16.msra.mxu1 %v348_v25 }
 0x1c9   :  { %v185_v27 = vpop.f32.mrb[0].mxu1 }
 0x1ca   :  { %v186_v28 = vadd.f32 %v185_v27, %v23_v26  ;;  %v320_v29 = vpop.f32.mrb[1].mxu1 }
 0x1cc   :  { %vm189_vm4 = vcmp.gt.f32.partialorder %v186_v28, 0.0  ;;  %v190_v30 = vmul.f32 0.1, %v186_v28 }
 0x1ce   :  { %v191_v31 = vsel %vm189_vm4, %v186_v28, %v190_v30 }
 0x1cf   :  { %330 = vmatmul.mubr.msk.f32.vlgmr.msra.gmra.mrb[2].mxu1 %vm115_vm3, %v191_v31 }
 0x2a2   :  { %v261_v33 = vpop.f32.mrb[2].mxu1 }
 0x2a3   :  { %v262_v34 = vadd.f32 %v261_v33, %v24_v32  ;;  %v331_v35 = vpop.f32.mrb[3].mxu1 }
 0x2a5   :  { %v280_v36 = vmul.f32 -1.442695, %v262_v34 }
 0x2a7   :  { %356 = vpow2.f32 %v280_v36 }
 0x2b1   :  { %v357_v37 = vpop.eup %356 }
 0x2b2   :  { %v268_v38 = vadd.f32 1.0, %v357_v37 }
 0x2b4   :  { %358 = vrcp.f32 %v268_v38 }
 0x2be   :  { %v359_v39 = vpop.eup %358 }
 0x2bf   :  { %271 = vst [vmem:[%s421_s1] sm:$0x1] %v359_v39 }
 0x2c0   :  { %276 = vsyncpa [#allocation3], 1 }

</bundles_post_ra>
